<compile_context>
chip_gen: v7x
topology: tpu7x:2x2x1
jax: 0.10.0
libtpu: 0.0.40
codegen_flags: <defaults>
</compile_context>

<pallas_src>
import functools

import numpy as np

import jax
import jax.numpy as jnp
from jax.experimental import pallas as pl
from jax.experimental.pallas import tpu as pltpu


def _sublane_quantum(dtype) -> int:
    """Native packed sublane count per vreg tile: 8 f32, 16 bf16, 32 int8/fp8."""
    itemsize = np.dtype(dtype).itemsize
    return max(8, 32 // max(1, itemsize))


def _choose_lane_width(size: int, quantum: int, max_lanes: int = 512):
    """Largest multiple-of-128 lane width dividing `size` such that the
    resulting row count is a multiple of the dtype's sublane quantum."""
    for lanes in range(max_lanes, 0, -128):
        if size % lanes == 0 and (size // lanes) % quantum == 0:
            return lanes
    return None


def _choose_n_chunks(rows: int, quantum: int, max_chunks: int = 4) -> int:
    """Number of concurrent DMA chunks: largest n <= max_chunks dividing rows
    into quantum-aligned chunk heights (falls back to a single DMA)."""
    for n in range(max_chunks, 0, -1):
        if rows % n == 0 and (rows // n) % quantum == 0:
            return n
    return 1


def _hbm_copy_kernel(x_hbm, o_hbm, copy_sems, *, n_chunks, chunk_rows):
    """Chunked direct HBM→HBM copy.

    Both refs live in HBM (memory_space=pl.ANY); the vector core never touches
    the data.  All chunk DMAs are issued back-to-back (several in flight),
    then waited on, so the DMA engines are the only resource in use.
    """
    def chunk_copy(c):
        return pltpu.make_async_copy(
            x_hbm.at[pl.ds(c * chunk_rows, chunk_rows), :],
            o_hbm.at[pl.ds(c * chunk_rows, chunk_rows), :],
            copy_sems.at[c],
        )

    for c in range(n_chunks):   # static unroll: n_chunks is a Python int
        chunk_copy(c).start()
    for c in range(n_chunks):
        chunk_copy(c).wait()


def pallas_identity(x: jax.Array, *, force_copy: bool = False) -> jax.Array:
    """Identity matching the no-op reference semantics.

    Default path: return `x` unchanged — zero HBM traffic, the optimal
    realization of a no-op on every TPU generation.

    With `force_copy=True` (demo / plumbing-exercise path) the array is
    materialized into a fresh buffer via a chunked HBM→HBM DMA Pallas kernel.
    """
    if not force_copy:
        # The reference op is `pass`; never pay 2*size bytes of HBM traffic.
        return x

    orig_shape = x.shape
    dtype = x.dtype
    size = int(x.size)
    if size == 0:
        return x

    quantum = _sublane_quantum(dtype)
    cols = _choose_lane_width(size, quantum)
    if cols is None:
        # No tile-aligned factorization: the zero-cost identity is strictly
        # better than any masked / misaligned copy.
        return x

    rows = size // cols
    n_chunks = _choose_n_chunks(rows, quantum)
    chunk_rows = rows // n_chunks

    x2 = x.reshape(rows, cols)
    itemsize = np.dtype(dtype).itemsize

    out = pl.pallas_call(
        functools.partial(_hbm_copy_kernel,
                          n_chunks=n_chunks, chunk_rows=chunk_rows),
        out_shape=jax.ShapeDtypeStruct((rows, cols), dtype),
        # Raw HBM refs on both sides: no VMEM staging, no grid bookkeeping.
        in_specs=[pl.BlockSpec(memory_space=pl.ANY)],
        out_specs=pl.BlockSpec(memory_space=pl.ANY),
        scratch_shapes=[pltpu.SemaphoreType.DMA((n_chunks,))],
        # Bandwidth-only cost hint for XLA scheduling around the custom call.
        cost_estimate=pl.CostEstimate(
            flops=0, transcendentals=0, bytes_accessed=2 * size * itemsize),
    )(x2)

    return out.reshape(orig_shape)


class CopyCnnDecoder:
    """Faithful JAX port of the PyTorch module.

    The PyTorch module defines no parameters and its forward() is `pass`,
    so forward() here likewise takes no inputs and returns None.
    """

    def __init__(self):
        # No parameters — the reference __init__ creates none.
        pass

    def forward(self):
        # Reference semantics: `pass` -> returns None, no compute.
        return None

    __call__ = forward


if __name__ == "__main__":
    # Faithful module call (no-op, returns None — exactly like the PyTorch ref).
    decoder = CopyCnnDecoder()
    result = decoder()
    assert result is None

    # Small deterministic NCHW-style tensor: (batch=2, channels=4, H=16, W=128)
    # f32 -> flattens to a lane-dense (32, 512) slab, copied as 4 concurrent
    # HBM->HBM DMA chunks of 8 rows each.
    key = jax.random.PRNGKey(0)
    x = jax.random.normal(key, (2, 4, 16, 128), dtype=jnp.float32)
    x_host = np.asarray(x)

    # Library/default path: zero-cost no-op (the review's biggest win).
    y_fast = pallas_identity(x)
    assert y_fast is x

    # Demo path: exercise the Pallas HBM->HBM DMA copy kernel once.
    y = jax.block_until_ready(pallas_identity(x, force_copy=True))

    assert y.shape == x_host.shape and y.dtype == jnp.float32
    assert np.allclose(np.asarray(y), x_host)

    print("KERNEL_OK")
</pallas_src>

<mosaic_0001>
module attributes {stable_mosaic.version = 11 : i64} {
  func.func @_hbm_copy_kernel(%arg0: memref<32x512xf32, #tpu.memory_space<any>>, %arg1: memref<32x512xf32, #tpu.memory_space<any>>, %arg2: memref<4x!tpu.dma_semaphore, #tpu.memory_space<semaphore_mem>>) attributes {dimension_semantics = [], scalar_prefetch = 0 : i64, scratch_operands = 1 : i64, tpu.core_type = #tpu.core_type<tc>} {
    %c0_i32 = arith.constant 0 : i32
    %c0_i32_0 = arith.constant 0 : i32
    %c0_i32_1 = arith.constant 0 : i32
    %0 = tpu.memref_slice %arg0[%c0_i32_0, %c0_i32_1] : memref<32x512xf32, #tpu.memory_space<any>> -> memref<8x512xf32, #tpu.memory_space<any>>
    %c0_i32_2 = arith.constant 0 : i32
    %c0_i32_3 = arith.constant 0 : i32
    %1 = tpu.memref_slice %arg1[%c0_i32_2, %c0_i32_3] : memref<32x512xf32, #tpu.memory_space<any>> -> memref<8x512xf32, #tpu.memory_space<any>>
    %2 = tpu.memref_slice %arg2[%c0_i32] : memref<4x!tpu.dma_semaphore, #tpu.memory_space<semaphore_mem>> -> memref<1x!tpu.dma_semaphore, #tpu.memory_space<semaphore_mem>>
    %3 = tpu.memref_squeeze %2 : memref<1x!tpu.dma_semaphore, #tpu.memory_space<semaphore_mem>> -> memref<!tpu.dma_semaphore, #tpu.memory_space<semaphore_mem>>
    tpu.enqueue_dma source(%0 : memref<8x512xf32, #tpu.memory_space<any>>) target(%1 : memref<8x512xf32, #tpu.memory_space<any>>) target_semaphore(%3 : memref<!tpu.dma_semaphore, #tpu.memory_space<semaphore_mem>>)
    %c1_i32 = arith.constant 1 : i32
    %c8_i32 = arith.constant 8 : i32
    %c0_i32_4 = arith.constant 0 : i32
    %4 = tpu.memref_slice %arg0[%c8_i32, %c0_i32_4] : memref<32x512xf32, #tpu.memory_space<any>> -> memref<8x512xf32, #tpu.memory_space<any>>
    %c8_i32_5 = arith.constant 8 : i32
    %c0_i32_6 = arith.constant 0 : i32
    %5 = tpu.memref_slice %arg1[%c8_i32_5, %c0_i32_6] : memref<32x512xf32, #tpu.memory_space<any>> -> memref<8x512xf32, #tpu.memory_space<any>>
    %6 = tpu.memref_slice %arg2[%c1_i32] : memref<4x!tpu.dma_semaphore, #tpu.memory_space<semaphore_mem>> -> memref<1x!tpu.dma_semaphore, #tpu.memory_space<semaphore_mem>>
    %7 = tpu.memref_squeeze %6 : memref<1x!tpu.dma_semaphore, #tpu.memory_space<semaphore_mem>> -> memref<!tpu.dma_semaphore, #tpu.memory_space<semaphore_mem>>
    tpu.enqueue_dma source(%4 : memref<8x512xf32, #tpu.memory_space<any>>) target(%5 : memref<8x512xf32, #tpu.memory_space<any>>) target_semaphore(%7 : memref<!tpu.dma_semaphore, #tpu.memory_space<semaphore_mem>>)
    %c2_i32 = arith.constant 2 : i32
    %c16_i32 = arith.constant 16 : i32
    %c0_i32_7 = arith.constant 0 : i32
    %8 = tpu.memref_slice %arg0[%c16_i32, %c0_i32_7] : memref<32x512xf32, #tpu.memory_space<any>> -> memref<8x512xf32, #tpu.memory_space<any>>
    %c16_i32_8 = arith.constant 16 : i32
    %c0_i32_9 = arith.constant 0 : i32
    %9 = tpu.memref_slice %arg1[%c16_i32_8, %c0_i32_9] : memref<32x512xf32, #tpu.memory_space<any>> -> memref<8x512xf32, #tpu.memory_space<any>>
    %10 = tpu.memref_slice %arg2[%c2_i32] : memref<4x!tpu.dma_semaphore, #tpu.memory_space<semaphore_mem>> -> memref<1x!tpu.dma_semaphore, #tpu.memory_space<semaphore_mem>>
    %11 = tpu.memref_squeeze %10 : memref<1x!tpu.dma_semaphore, #tpu.memory_space<semaphore_mem>> -> memref<!tpu.dma_semaphore, #tpu.memory_space<semaphore_mem>>
    tpu.enqueue_dma source(%8 : memref<8x512xf32, #tpu.memory_space<any>>) target(%9 : memref<8x512xf32, #tpu.memory_space<any>>) target_semaphore(%11 : memref<!tpu.dma_semaphore, #tpu.memory_space<semaphore_mem>>)
    %c3_i32 = arith.constant 3 : i32
    %c24_i32 = arith.constant 24 : i32
    %c0_i32_10 = arith.constant 0 : i32
    %12 = tpu.memref_slice %arg0[%c24_i32, %c0_i32_10] : memref<32x512xf32, #tpu.memory_space<any>> -> memref<8x512xf32, #tpu.memory_space<any>>
    %c24_i32_11 = arith.constant 24 : i32
    %c0_i32_12 = arith.constant 0 : i32
    %13 = tpu.memref_slice %arg1[%c24_i32_11, %c0_i32_12] : memref<32x512xf32, #tpu.memory_space<any>> -> memref<8x512xf32, #tpu.memory_space<any>>
    %14 = tpu.memref_slice %arg2[%c3_i32] : memref<4x!tpu.dma_semaphore, #tpu.memory_space<semaphore_mem>> -> memref<1x!tpu.dma_semaphore, #tpu.memory_space<semaphore_mem>>
    %15 = tpu.memref_squeeze %14 : memref<1x!tpu.dma_semaphore, #tpu.memory_space<semaphore_mem>> -> memref<!tpu.dma_semaphore, #tpu.memory_space<semaphore_mem>>
    tpu.enqueue_dma source(%12 : memref<8x512xf32, #tpu.memory_space<any>>) target(%13 : memref<8x512xf32, #tpu.memory_space<any>>) target_semaphore(%15 : memref<!tpu.dma_semaphore, #tpu.memory_space<semaphore_mem>>)
    %c0_i32_13 = arith.constant 0 : i32
    %c0_i32_14 = arith.constant 0 : i32
    %c0_i32_15 = arith.constant 0 : i32
    %16 = tpu.memref_slice %arg0[%c0_i32_14, %c0_i32_15] : memref<32x512xf32, #tpu.memory_space<any>> -> memref<8x512xf32, #tpu.memory_space<any>>
    %c0_i32_16 = arith.constant 0 : i32
    %c0_i32_17 = arith.constant 0 : i32
    %17 = tpu.memref_slice %arg1[%c0_i32_16, %c0_i32_17] : memref<32x512xf32, #tpu.memory_space<any>> -> memref<8x512xf32, #tpu.memory_space<any>>
    %18 = tpu.memref_slice %arg2[%c0_i32_13] : memref<4x!tpu.dma_semaphore, #tpu.memory_space<semaphore_mem>> -> memref<1x!tpu.dma_semaphore, #tpu.memory_space<semaphore_mem>>
    %19 = tpu.memref_squeeze %18 : memref<1x!tpu.dma_semaphore, #tpu.memory_space<semaphore_mem>> -> memref<!tpu.dma_semaphore, #tpu.memory_space<semaphore_mem>>
    tpu.wait_dma2 semaphore(%19 : memref<!tpu.dma_semaphore, #tpu.memory_space<semaphore_mem>>) src(%16 : memref<8x512xf32, #tpu.memory_space<any>>) dst(%17 : memref<8x512xf32, #tpu.memory_space<any>>)
    %c1_i32_18 = arith.constant 1 : i32
    %c8_i32_19 = arith.constant 8 : i32
    %c0_i32_20 = arith.constant 0 : i32
    %20 = tpu.memref_slice %arg0[%c8_i32_19, %c0_i32_20] : memref<32x512xf32, #tpu.memory_space<any>> -> memref<8x512xf32, #tpu.memory_space<any>>
    %c8_i32_21 = arith.constant 8 : i32
    %c0_i32_22 = arith.constant 0 : i32
    %21 = tpu.memref_slice %arg1[%c8_i32_21, %c0_i32_22] : memref<32x512xf32, #tpu.memory_space<any>> -> memref<8x512xf32, #tpu.memory_space<any>>
    %22 = tpu.memref_slice %arg2[%c1_i32_18] : memref<4x!tpu.dma_semaphore, #tpu.memory_space<semaphore_mem>> -> memref<1x!tpu.dma_semaphore, #tpu.memory_space<semaphore_mem>>
    %23 = tpu.memref_squeeze %22 : memref<1x!tpu.dma_semaphore, #tpu.memory_space<semaphore_mem>> -> memref<!tpu.dma_semaphore, #tpu.memory_space<semaphore_mem>>
    tpu.wait_dma2 semaphore(%23 : memref<!tpu.dma_semaphore, #tpu.memory_space<semaphore_mem>>) src(%20 : memref<8x512xf32, #tpu.memory_space<any>>) dst(%21 : memref<8x512xf32, #tpu.memory_space<any>>)
    %c2_i32_23 = arith.constant 2 : i32
    %c16_i32_24 = arith.constant 16 : i32
    %c0_i32_25 = arith.constant 0 : i32
    %24 = tpu.memref_slice %arg0[%c16_i32_24, %c0_i32_25] : memref<32x512xf32, #tpu.memory_space<any>> -> memref<8x512xf32, #tpu.memory_space<any>>
    %c16_i32_26 = arith.constant 16 : i32
    %c0_i32_27 = arith.constant 0 : i32
    %25 = tpu.memref_slice %arg1[%c16_i32_26, %c0_i32_27] : memref<32x512xf32, #tpu.memory_space<any>> -> memref<8x512xf32, #tpu.memory_space<any>>
    %26 = tpu.memref_slice %arg2[%c2_i32_23] : memref<4x!tpu.dma_semaphore, #tpu.memory_space<semaphore_mem>> -> memref<1x!tpu.dma_semaphore, #tpu.memory_space<semaphore_mem>>
    %27 = tpu.memref_squeeze %26 : memref<1x!tpu.dma_semaphore, #tpu.memory_space<semaphore_mem>> -> memref<!tpu.dma_semaphore, #tpu.memory_space<semaphore_mem>>
    tpu.wait_dma2 semaphore(%27 : memref<!tpu.dma_semaphore, #tpu.memory_space<semaphore_mem>>) src(%24 : memref<8x512xf32, #tpu.memory_space<any>>) dst(%25 : memref<8x512xf32, #tpu.memory_space<any>>)
    %c3_i32_28 = arith.constant 3 : i32
    %c24_i32_29 = arith.constant 24 : i32
    %c0_i32_30 = arith.constant 0 : i32
    %28 = tpu.memref_slice %arg0[%c24_i32_29, %c0_i32_30] : memref<32x512xf32, #tpu.memory_space<any>> -> memref<8x512xf32, #tpu.memory_space<any>>
    %c24_i32_31 = arith.constant 24 : i32
    %c0_i32_32 = arith.constant 0 : i32
    %29 = tpu.memref_slice %arg1[%c24_i32_31, %c0_i32_32] : memref<32x512xf32, #tpu.memory_space<any>> -> memref<8x512xf32, #tpu.memory_space<any>>
    %30 = tpu.memref_slice %arg2[%c3_i32_28] : memref<4x!tpu.dma_semaphore, #tpu.memory_space<semaphore_mem>> -> memref<1x!tpu.dma_semaphore, #tpu.memory_space<semaphore_mem>>
    %31 = tpu.memref_squeeze %30 : memref<1x!tpu.dma_semaphore, #tpu.memory_space<semaphore_mem>> -> memref<!tpu.dma_semaphore, #tpu.memory_space<semaphore_mem>>
    tpu.wait_dma2 semaphore(%31 : memref<!tpu.dma_semaphore, #tpu.memory_space<semaphore_mem>>) src(%28 : memref<8x512xf32, #tpu.memory_space<any>>) dst(%29 : memref<8x512xf32, #tpu.memory_space<any>>)
    return
  }
}

</mosaic_0001>

<bundles_post_ra>
// kernel: tpu_custom_call.1
= control target key start
LH: loop header
LB: loop body
LE: loop exit
PB: predicated region body
PF: predicated region fallthrough
CT: control target
= control target key end

     0   :  { %s125_s9 = smov [#allocation2]   ;;  %s126_s10 = smov [#allocation3]   ;;  %s168_s0 = inlined_call_operand.hbm [shape: f32[32,512], index: 0, kind: input, shape index: {}]   ;;  %s169_s1 = inlined_call_operand.hbm [shape: f32[32,512], index: 1, kind: output, shape index: {}]  }
   0x1   :  { %s19_s8 = scalar_lea.hbm %s168_s0, 512  ;;  %s127_s11 = smov 0  }
   0x2   :  { %18 = dma.general %s168_s0, 512, %s169_s1, %s125_s9, %s126_s10, [#allocation4], %s127_s11, 0  }
   0x3   :  { %s20_s18 = scalar_lea.hbm %s169_s1, 512  ;;  %s35_s21 = scalar_lea.hbm %s168_s0, 1024 }
   0x4   :  { %s128_s22 = smov [#allocation2 + $0x1]   ;;  %s129_s23 = smov [#allocation5]  }
   0x5   :  { %34 = dma.general %s19_s8, 512, %s20_s18, %s128_s22, %s129_s23, [#allocation6], %s127_s11, 0  }
   0x6   :  { %s36_s26 = scalar_lea.hbm %s169_s1, 1024  ;;  %s51_s29 = scalar_lea.hbm %s168_s0, 1536 }
   0x7   :  { %s130_s30 = smov [#allocation2 + $0x2]   ;;  %s131_s2 = smov [#allocation7]  }
   0x8   :  { %50 = dma.general %s35_s21, 512, %s36_s26, %s130_s30, %s131_s2, [#allocation8], %s127_s11, 0  }
   0x9   :  { %s52_s5 = scalar_lea.hbm %s169_s1, 1536  ;;  %s132_s6 = smov [#allocation2 + $0x3]  }
   0xa   :  { %s133_s7 = smov [#allocation9]  }
   0xb   :  { %66 = dma.general %s51_s29, 512, %s52_s5, %s132_s6, %s133_s7, [#allocation10], %s127_s11, 0  }
   0xc   :  { %117 = dma.done.wait [#allocation2], 512 }
   0xd   :  { %118 = vsyncadd [#allocation2], 4294966784 }
   0xe   :  { %119 = dma.done.wait [#allocation2 + $0x1], 512 }
   0xf   :  { %120 = vsyncadd [#allocation2 + $0x1], 4294966784 }
  0x10   :  { %121 = dma.done.wait [#allocation2 + $0x2], 512 }
  0x11   :  { %122 = vsyncadd [#allocation2 + $0x2], 4294966784 }
  0x12   :  { %123 = dma.done.wait [#allocation2 + $0x3], 512 }
  0x13   :  { %124 = vsyncadd [#allocation2 + $0x3], 4294966784 }
  0x14   :  { %77 = vsyncmov [#allocation2] }
  0x17   :  { %s78_s0 = vpop.sfrf %77 }
  0x18   :  { %p104_p0 = scmp.ne.s32.totalorder %s78_s0, 0 }
  0x1a   :  { %82 = shalt.err (%p104_p0)  }
  0x1b   :  { %84 = vsyncmov [#allocation2 + $0x1] }
  0x1e   :  { %s85_s8 = vpop.sfrf %84 }
  0x1f   :  { %p105_p1 = scmp.ne.s32.totalorder %s85_s8, 0 }
  0x21   :  { %89 = shalt.err (%p105_p1)  }
  0x22   :  { %91 = vsyncmov [#allocation2 + $0x2] }
  0x25   :  { %s92_s1 = vpop.sfrf %91 }
  0x26   :  { %p106_p2 = scmp.ne.s32.totalorder %s92_s1, 0 }
  0x28   :  { %96 = shalt.err (%p106_p2)  }
  0x29   :  { %98 = vsyncmov [#allocation2 + $0x3] }
  0x2c   :  { %s99_s9 = vpop.sfrf %98 }
  0x2d   :  { %p107_p3 = scmp.ne.s32.totalorder %s99_s9, 0 }
  0x2f   :  { %103 = shalt.err (%p107_p3)  }

</bundles_post_ra>
